<compile_context>
chip_gen: v5e
topology: v5e:2x2
jax: 0.10.0
libtpu: 0.0.40
codegen_flags: <defaults>
</compile_context>

<pallas_src>
import functools

import jax
import jax.numpy as jnp
from jax.experimental import pallas as pl
from jax.experimental.pallas import tpu as pltpu

LANE = 128
NEG_INF = -1e30  # padded-logit bias; exp(NEG_INF - m) underflows to exactly 0


def _round_up(n, m):
    return ((n + m - 1) // m) * m


def actor_kernel(x_ref, w1_ref, b1_ref, w2_ref, b2_ref, w3_ref, b3_ref, o_ref):
    # fc1 + ReLU (bf16 operands, f32 accumulation on the MXU)
    x = x_ref[...].astype(jnp.bfloat16)
    h1 = jnp.dot(x, w1_ref[...], preferred_element_type=jnp.float32)
    h1 = jnp.maximum(h1 + b1_ref[...], 0.0)
    # fc2 + ReLU
    h2 = jnp.dot(h1.astype(jnp.bfloat16), w2_ref[...],
                 preferred_element_type=jnp.float32)
    h2 = jnp.maximum(h2 + b2_ref[...], 0.0)
    # fc3 (padded logit lanes carry bias = NEG_INF -> exactly 0 probability)
    logits = jnp.dot(h2.astype(jnp.bfloat16), w3_ref[...],
                     preferred_element_type=jnp.float32)
    logits = logits + b3_ref[...]
    # numerically stable softmax; exact division so rows sum to 1 tightly
    m = jnp.max(logits, axis=-1, keepdims=True)
    e = jnp.exp(logits - m)
    denom = jnp.sum(e, axis=-1, keepdims=True)
    o_ref[...] = (e / denom).astype(o_ref.dtype)


def pad_params(w1, b1, w2, b2, w3, b3):
    """One-time layout prep.

    Pads hidden/output feature dims to LANE multiples (zero weight rows/cols,
    NEG_INF padded fc3 bias lanes) and casts weights to bf16. Biases stay f32
    (added post-accumulation on the VPU).
    """
    state_dim, hidden = w1.shape
    out_dim = w3.shape[1]
    hp = _round_up(hidden, LANE)
    op = _round_up(out_dim, LANE)

    w1p = jnp.zeros((state_dim, hp), jnp.float32).at[:, :hidden].set(w1)
    w2p = jnp.zeros((hp, hp), jnp.float32).at[:hidden, :hidden].set(w2)
    w3p = jnp.zeros((hp, op), jnp.float32).at[:hidden, :out_dim].set(w3)
    b1p = jnp.zeros((1, hp), jnp.float32).at[:, :hidden].set(b1)
    b2p = jnp.zeros((1, hp), jnp.float32).at[:, :hidden].set(b2)
    b3p = jnp.full((1, op), NEG_INF, jnp.float32).at[:, :out_dim].set(b3)
    return (w1p.astype(jnp.bfloat16), b1p,
            w2p.astype(jnp.bfloat16), b2p,
            w3p.astype(jnp.bfloat16), b3p)


@functools.partial(jax.jit,
                   static_argnames=("out_dim", "block_b", "return_padded"))
def actor_forward(state, w1, b1, w2, b2, w3, b3, *, out_dim,
                  block_b=None, return_padded=False):
    """state: [B, state_dim] f32; params already padded via pad_params."""
    B, state_dim = state.shape
    hidden_p = w1.shape[1]
    out_p = w3.shape[1]

    # Fixed, aligned batch tile; pad B up to a multiple of it.
    if block_b is None:
        block_b = min(256, _round_up(B, 8))
    B_pad = _round_up(B, block_b)
    if B_pad != B:
        state = jnp.zeros((B_pad, state_dim), state.dtype).at[:B].set(state)
    grid = (B_pad // block_b,)
    single_step = grid[0] == 1

    const_map = lambda i: (0, 0)

    def weight_spec(shape):
        # Constant blocks across the grid: single-buffer (no 2x VMEM).
        return pl.BlockSpec(shape, const_map, pipeline_mode=pl.Buffered(1))

    # With a single grid step there is nothing to pipeline: single-buffer the
    # activation input/output blocks as well.
    act_mode = dict(pipeline_mode=pl.Buffered(1)) if single_step else {}

    in_specs = [
        pl.BlockSpec((block_b, state_dim), lambda i: (i, 0), **act_mode),  # x
        weight_spec((state_dim, hidden_p)),                                # w1
        weight_spec((1, hidden_p)),                                        # b1
        weight_spec((hidden_p, hidden_p)),                                 # w2
        weight_spec((1, hidden_p)),                                        # b2
        weight_spec((hidden_p, out_p)),                                    # w3
        weight_spec((1, out_p)),                                           # b3
    ]
    out_spec = pl.BlockSpec((block_b, out_p), lambda i: (i, 0), **act_mode)

    # VMEM budget: bf16 weights + f32 biases + (double-buffered) x/out blocks
    # + f32 h1/h2 temporaries, with 2x headroom, clamped to [32 MiB, 56 MiB].
    weight_bytes = sum(int(a.size) * a.dtype.itemsize
                       for a in (w1, w2, w3, b1, b2, b3))
    act_bytes = 2 * block_b * (state_dim + out_p) * 4
    tmp_bytes = 2 * block_b * hidden_p * 4
    est = weight_bytes + act_bytes + tmp_bytes
    vmem_limit = int(min(56 * 2**20, max(32 * 2**20, 2 * est)))

    out_padded = pl.pallas_call(
        actor_kernel,
        out_shape=jax.ShapeDtypeStruct((B_pad, out_p), state.dtype),
        grid_spec=pltpu.PrefetchScalarGridSpec(
            num_scalar_prefetch=0,
            grid=grid,
            in_specs=in_specs,
            out_specs=out_spec,
        ),
        compiler_params=pltpu.CompilerParams(
            dimension_semantics=("parallel",),
            vmem_limit_bytes=vmem_limit,
        ),
    )(state, w1, b1, w2, b2, w3, b3)

    if return_padded:
        return out_padded          # (B_pad, out_p); consumer indexes itself
    return out_padded[:B, :out_dim]


def init_params(key, state_dim, hidden_size, output_size):
    """Deterministic Kaiming-uniform-ish init; weights stored as [in, out]."""
    ks = jax.random.split(key, 6)

    def lin(kw, kb, fan_in, fan_out):
        bound = 1.0 / jnp.sqrt(fan_in)
        w = jax.random.uniform(kw, (fan_in, fan_out), jnp.float32, -bound, bound)
        b = jax.random.uniform(kb, (1, fan_out), jnp.float32, -bound, bound)
        return w, b

    w1, b1 = lin(ks[0], ks[1], state_dim, hidden_size)
    w2, b2 = lin(ks[2], ks[3], hidden_size, hidden_size)
    w3, b3 = lin(ks[4], ks[5], hidden_size, output_size)
    return w1, b1, w2, b2, w3, b3


def reference_forward(state, w1, b1, w2, b2, w3, b3):
    h1 = jax.nn.relu(state @ w1 + b1)
    h2 = jax.nn.relu(h1 @ w2 + b2)
    return jax.nn.softmax(h2 @ w3 + b3, axis=-1)


if __name__ == "__main__":
    key = jax.random.PRNGKey(0)
    k_params, k_state = jax.random.split(key)

    state_dim = 16
    hidden_size = 32
    output_size = 8

    params = init_params(k_params, state_dim, hidden_size, output_size)
    padded = pad_params(*params)

    # Case 1: aligned small batch (single grid step).
    batch = 16
    state = jax.random.normal(k_state, (batch, state_dim), jnp.float32)
    out = actor_forward(state, *padded, out_dim=output_size)
    out = jax.block_until_ready(out)
    ref = reference_forward(state, *params)
    assert out.shape == (batch, output_size)
    # bf16 weights/activations on the matmuls -> loose tolerance vs f32 ref
    assert jnp.allclose(out, ref, atol=2e-2, rtol=2e-2), "mismatch vs reference"
    assert jnp.allclose(jnp.sum(out, axis=-1), 1.0, atol=1e-3), \
        "softmax rows must sum to 1"

    # Case 2: unaligned batch (exercises the batch-padding path).
    batch2 = 5
    state2 = jax.random.normal(jax.random.PRNGKey(1), (batch2, state_dim),
                               jnp.float32)
    out2 = actor_forward(state2, *padded, out_dim=output_size)
    out2 = jax.block_until_ready(out2)
    ref2 = reference_forward(state2, *params)
    assert out2.shape == (batch2, output_size)
    assert jnp.allclose(out2, ref2, atol=2e-2, rtol=2e-2), "mismatch (padded B)"
    assert jnp.allclose(jnp.sum(out2, axis=-1), 1.0, atol=1e-3), \
        "softmax rows must sum to 1 (padded B)"

    print("KERNEL_OK")
</pallas_src>

<mosaic_0001>
module attributes {stable_mosaic.version = 11 : i64} {
  func.func @actor_kernel(%arg0: i32, %arg1: memref<16x16xf32, #tpu.memory_space<vmem>>, %arg2: memref<16x128xbf16, #tpu.memory_space<vmem>>, %arg3: memref<1x128xf32, #tpu.memory_space<vmem>>, %arg4: memref<128x128xbf16, #tpu.memory_space<vmem>>, %arg5: memref<1x128xf32, #tpu.memory_space<vmem>>, %arg6: memref<128x128xbf16, #tpu.memory_space<vmem>>, %arg7: memref<1x128xf32, #tpu.memory_space<vmem>>, %arg8: memref<16x128xf32, #tpu.memory_space<vmem>>) attributes {dimension_semantics = [#tpu.dimension_semantics<parallel>], iteration_bounds = array<i64: 1>, scalar_prefetch = 0 : i64, scratch_operands = 0 : i64, tpu.core_type = #tpu.core_type<tc>, window_params = [{pipeline_mode = #tpu.pipeline_mode<synchronous>, transform_indices = @transform_0, window_bounds = array<i64: 16, 16>}, {pipeline_mode = #tpu.pipeline_mode<synchronous>, transform_indices = @transform_1, window_bounds = array<i64: 16, 128>}, {pipeline_mode = #tpu.pipeline_mode<synchronous>, transform_indices = @transform_2, window_bounds = array<i64: 1, 128>}, {pipeline_mode = #tpu.pipeline_mode<synchronous>, transform_indices = @transform_3, window_bounds = array<i64: 128, 128>}, {pipeline_mode = #tpu.pipeline_mode<synchronous>, transform_indices = @transform_4, window_bounds = array<i64: 1, 128>}, {pipeline_mode = #tpu.pipeline_mode<synchronous>, transform_indices = @transform_5, window_bounds = array<i64: 128, 128>}, {pipeline_mode = #tpu.pipeline_mode<synchronous>, transform_indices = @transform_6, window_bounds = array<i64: 1, 128>}, {pipeline_mode = #tpu.pipeline_mode<synchronous>, transform_indices = @transform_7, window_bounds = array<i64: 16, 128>}]} {
    %c0 = arith.constant 0 : index
    %c0_0 = arith.constant 0 : index
    %0 = vector.load %arg1[%c0, %c0_0] : memref<16x16xf32, #tpu.memory_space<vmem>>, vector<16x16xf32>
    %1 = arith.truncf %0 : vector<16x16xf32> to vector<16x16xbf16>
    %c0_1 = arith.constant 0 : index
    %c0_2 = arith.constant 0 : index
    %2 = vector.load %arg2[%c0_1, %c0_2] : memref<16x128xbf16, #tpu.memory_space<vmem>>, vector<16x128xbf16>
    %cst = arith.constant dense<0.000000e+00> : vector<16x128xf32>
    %3 = tpu.matmul %1, %2, %cst {dimension_numbers = #tpu.dot_dimension_numbers<[1], [0], [0], [1], [0, 0, 1, 1], [], []>} : vector<16x16xbf16>, vector<16x128xbf16>, vector<16x128xf32> -> vector<16x128xf32>
    %c0_3 = arith.constant 0 : index
    %c0_4 = arith.constant 0 : index
    %4 = vector.load %arg3[%c0_3, %c0_4] : memref<1x128xf32, #tpu.memory_space<vmem>>, vector<1x128xf32>
    %5 = vector.broadcast %4 : vector<1x128xf32> to vector<16x128xf32>
    %6 = arith.addf %3, %5 : vector<16x128xf32>
    %cst_5 = arith.constant 0.000000e+00 : f32
    %7 = vector.broadcast %cst_5 : f32 to vector<16x128xf32>
    %8 = arith.maximumf %6, %7 : vector<16x128xf32>
    %9 = arith.truncf %8 : vector<16x128xf32> to vector<16x128xbf16>
    %c0_6 = arith.constant 0 : index
    %c0_7 = arith.constant 0 : index
    %10 = vector.load %arg4[%c0_6, %c0_7] : memref<128x128xbf16, #tpu.memory_space<vmem>>, vector<128x128xbf16>
    %cst_8 = arith.constant dense<0.000000e+00> : vector<16x128xf32>
    %11 = tpu.matmul %9, %10, %cst_8 {dimension_numbers = #tpu.dot_dimension_numbers<[1], [0], [0], [1], [0, 0, 1, 1], [], []>} : vector<16x128xbf16>, vector<128x128xbf16>, vector<16x128xf32> -> vector<16x128xf32>
    %c0_9 = arith.constant 0 : index
    %c0_10 = arith.constant 0 : index
    %12 = vector.load %arg5[%c0_9, %c0_10] : memref<1x128xf32, #tpu.memory_space<vmem>>, vector<1x128xf32>
    %13 = vector.broadcast %12 : vector<1x128xf32> to vector<16x128xf32>
    %14 = arith.addf %11, %13 : vector<16x128xf32>
    %cst_11 = arith.constant 0.000000e+00 : f32
    %15 = vector.broadcast %cst_11 : f32 to vector<16x128xf32>
    %16 = arith.maximumf %14, %15 : vector<16x128xf32>
    %17 = arith.truncf %16 : vector<16x128xf32> to vector<16x128xbf16>
    %c0_12 = arith.constant 0 : index
    %c0_13 = arith.constant 0 : index
    %18 = vector.load %arg6[%c0_12, %c0_13] : memref<128x128xbf16, #tpu.memory_space<vmem>>, vector<128x128xbf16>
    %cst_14 = arith.constant dense<0.000000e+00> : vector<16x128xf32>
    %19 = tpu.matmul %17, %18, %cst_14 {dimension_numbers = #tpu.dot_dimension_numbers<[1], [0], [0], [1], [0, 0, 1, 1], [], []>} : vector<16x128xbf16>, vector<128x128xbf16>, vector<16x128xf32> -> vector<16x128xf32>
    %c0_15 = arith.constant 0 : index
    %c0_16 = arith.constant 0 : index
    %20 = vector.load %arg7[%c0_15, %c0_16] : memref<1x128xf32, #tpu.memory_space<vmem>>, vector<1x128xf32>
    %21 = vector.broadcast %20 : vector<1x128xf32> to vector<16x128xf32>
    %22 = arith.addf %19, %21 : vector<16x128xf32>
    %cst_17 = arith.constant dense<0xFF800000> : vector<16xf32>
    %23 = vector.multi_reduction <maximumf>, %22, %cst_17 [1] : vector<16x128xf32> to vector<16xf32>
    %24 = vector.shape_cast %23 : vector<16xf32> to vector<16x1xf32>
    %25 = vector.broadcast %24 : vector<16x1xf32> to vector<16x128xf32>
    %26 = arith.subf %22, %25 : vector<16x128xf32>
    %27 = math.exp %26 : vector<16x128xf32>
    %cst_18 = arith.constant dense<0.000000e+00> : vector<16xf32>
    %28 = vector.multi_reduction <add>, %27, %cst_18 [1] : vector<16x128xf32> to vector<16xf32>
    %29 = vector.shape_cast %28 : vector<16xf32> to vector<16x1xf32>
    %30 = vector.broadcast %29 : vector<16x1xf32> to vector<16x128xf32>
    %31 = arith.divf %27, %30 : vector<16x128xf32>
    %c0_19 = arith.constant 0 : index
    %c0_20 = arith.constant 0 : index
    %32 = vector.load %arg8[%c0_19, %c0_20] : memref<16x128xf32, #tpu.memory_space<vmem>>, vector<16x128xf32>
    tpu.vector_store %arg8[%c0_19, %c0_20], %31 {strides = array<i32>} : memref<16x128xf32, #tpu.memory_space<vmem>>, vector<16x128xf32>,
    return
  }
  func.func @transform_0(%arg0: i32) -> (i32, i32) {
    %c0_i32 = arith.constant 0 : i32
    %c0_i32_0 = arith.constant 0 : i32
    return %arg0, %c0_i32 : i32, i32
  }
  func.func @transform_1(%arg0: i32) -> (i32, i32) {
    %c0_i32 = arith.constant 0 : i32
    %c0_i32_0 = arith.constant 0 : i32
    %c0_i32_1 = arith.constant 0 : i32
    return %c0_i32, %c0_i32_0 : i32, i32
  }
  func.func @transform_2(%arg0: i32) -> (i32, i32) {
    %c0_i32 = arith.constant 0 : i32
    %c0_i32_0 = arith.constant 0 : i32
    %c0_i32_1 = arith.constant 0 : i32
    return %c0_i32, %c0_i32_0 : i32, i32
  }
  func.func @transform_3(%arg0: i32) -> (i32, i32) {
    %c0_i32 = arith.constant 0 : i32
    %c0_i32_0 = arith.constant 0 : i32
    %c0_i32_1 = arith.constant 0 : i32
    return %c0_i32, %c0_i32_0 : i32, i32
  }
  func.func @transform_4(%arg0: i32) -> (i32, i32) {
    %c0_i32 = arith.constant 0 : i32
    %c0_i32_0 = arith.constant 0 : i32
    %c0_i32_1 = arith.constant 0 : i32
    return %c0_i32, %c0_i32_0 : i32, i32
  }
  func.func @transform_5(%arg0: i32) -> (i32, i32) {
    %c0_i32 = arith.constant 0 : i32
    %c0_i32_0 = arith.constant 0 : i32
    %c0_i32_1 = arith.constant 0 : i32
    return %c0_i32, %c0_i32_0 : i32, i32
  }
  func.func @transform_6(%arg0: i32) -> (i32, i32) {
    %c0_i32 = arith.constant 0 : i32
    %c0_i32_0 = arith.constant 0 : i32
    %c0_i32_1 = arith.constant 0 : i32
    return %c0_i32, %c0_i32_0 : i32, i32
  }
  func.func @transform_7(%arg0: i32) -> (i32, i32) {
    %c0_i32 = arith.constant 0 : i32
    %c0_i32_0 = arith.constant 0 : i32
    return %arg0, %c0_i32 : i32, i32
  }
}

</mosaic_0001>

<bundles_post_ra>
// kernel: actor_forward.1
= control target key start
LH: loop header
LB: loop body
LE: loop exit
PB: predicated region body
PF: predicated region fallthrough
CT: control target
= control target key end

     0   :  { %12 = vsyncpa [#allocation3], 0  ;;  %s628_s0 = inlined_call_operand.hbm [shape: f32[16,16], index: 0, kind: input, shape index: {}]   ;;  %s629_s1 = inlined_call_operand.hbm [shape: bf16[16,128], index: 1, kind: input, shape index: {}]   ;;  %s630_s2 = inlined_call_operand.vmem [shape: f32[1,128], index: 2, kind: input, shape index: {}]   ;;  %s631_s3 = inlined_call_operand.hbm [shape: bf16[128,128], index: 3, kind: input, shape index: {}]   ;;  %s632_s4 = inlined_call_operand.vmem [shape: f32[1,128], index: 4, kind: input, shape index: {}]   ;;  %s633_s5 = inlined_call_operand.hbm [shape: bf16[128,128], index: 5, kind: input, shape index: {}]   ;;  %s634_s6 = inlined_call_operand.vmem [shape: f32[1,128], index: 6, kind: input, shape index: {}]   ;;  %s635_s7 = inlined_call_operand.vmem [shape: f32[16,128], index: 7, kind: output, shape index: {}]  }
   0x1   :  { %13 = vsyncpa [#allocation5], 0  ;;  %s32_s26 = sshll.u32 %s629_s1, 4  ;;  %s33_s26 = int_to_ptr.hbm [resolvable:$true] %s32_s26 }
   0x2   :  { %14 = vsyncpa [#allocation8], 0  ;;  %s553_s27 = smov [#allocation4]   ;;  %s19_s8 = sshll.u32 %s628_s0, 4  ;;  %s20_s8 = int_to_ptr.hbm [resolvable:$true] %s19_s8 }
   0x3   :  { %s34_s28 = sshll.u32 %s553_s27, 4  ;;  %s554_s9 = smov 64   ;;  %s35_s28 = int_to_ptr.vmem [resolvable:$true] %s34_s28 }
   0x4   :  { %s555_s10 = smov 4   ;;  %s556_s11 = smov [#allocation2]  }
   0x5   :  { %40 = dma.hbm_to_vmem [thread:$0]  %s33_s26, 128, %s35_s28, [#allocation5], %s554_s9, %s554_s9, %s555_s10  }
   0x6   :  { %s21_s12 = sshll.u32 %s556_s11, 4  ;;  %s557_s13 = smov 128   ;;  %s22_s12 = int_to_ptr.vmem [resolvable:$true] %s21_s12 }
   0x7   :  { %s558_s14 = smov 8   ;;  %s47_s16 = sshll.u32 %s631_s3, 4  ;;  %s48_s16 = int_to_ptr.hbm [resolvable:$true] %s47_s16 }
   0x8   :  { %27 = dma.hbm_to_vmem [thread:$0]  %s20_s8, 256, %s22_s12, [#allocation3], %s557_s13, %s557_s13, %s558_s14  }
   0x9   :  { %s559_s17 = smov [#allocation6]   ;;  %s62_s20 = sshll.u32 %s633_s5, 4  ;;  %s63_s20 = int_to_ptr.hbm [resolvable:$true] %s62_s20 }
   0xa   :  { %s49_s18 = sshll.u32 %s559_s17, 4  ;;  %s560_s21 = smov [#allocation7]   ;;  %s50_s18 = int_to_ptr.vmem [resolvable:$true] %s49_s18 }
   0xb   :  { %55 = dma.hbm_to_vmem [thread:$0]  %s48_s16, 1024, %s50_s18, [#allocation5], %s554_s9, %s554_s9, %s555_s10  }
   0xc   :  { %s64_s22 = sshll.u32 %s560_s21, 4  ;;  %s65_s22 = int_to_ptr.vmem [resolvable:$true] %s64_s22 }
   0xd   :  { %70 = dma.hbm_to_vmem [thread:$0]  %s63_s20, 1024, %s65_s22, [#allocation8], %s554_s9, %s554_s9, %s555_s10  }
   0xe   :  { %547 = dma.done.wait [#allocation3], 256  }
   0xf   :  { %548 = vsyncadd [#allocation3], 4294967040 }
  0x10   :  { %549 = dma.done.wait [#allocation5], 1152  }
  0x11   :  { %550 = vsyncadd [#allocation5], 4294966144 }
  0x12   :  { %551 = dma.done.wait [#allocation8], 1024  }
  0x13   :  { %552 = vsyncadd [#allocation8], 4294966272  ;;  %v415_v0 = vld [vmem:[#allocation4] sm:$0xff]  ;;  %v90_v1 = vld [vmem:[#allocation2] sm:$0xff]  ;;  %vm105_vm0 = vcmask 130048  }
  0x14   :  { %v91_v2 = vld [vmem:[#allocation2 + $0x8] sm:$0xff]  ;;  %v423_v4 = vld [vmem:[#allocation6 + $0x38] sm:$0xff]  ;;  %116 = vmatpush.bf16.msra.mxu0 %v415_v0  ;;  %v421_v6 = vld [vmem:[#allocation6 + $0x28] sm:$0xff] }
  0x15   :  { %v92_v3 = vpack.c.bf16 %v91_v2, %v90_v1  ;;  %194 = vmatpush.bf16.msra.mxu1 %v423_v4  ;;  %v422_v5 = vld [vmem:[#allocation6 + $0x30] sm:$0xff]  ;;  %v420_v7 = vld [vmem:[#allocation6 + $0x20] sm:$0xff]  ;;  %v419_v8 = vld [vmem:[#allocation6 + $0x18] sm:$0xff] }
  0x16   :  { %v418_v9 = vld [vmem:[#allocation6 + $0x10] sm:$0xff]  ;;  %v417_v10 = vld [vmem:[#allocation6 + $0x8] sm:$0xff]  ;;  %v416_v11 = vld [vmem:[#allocation6] sm:$0xff] }
  0x17   :  { %350 = vmatmul.msk.bf16.vlgmr.msra.gmra.mxu0 %vm105_vm0, %v92_v3  ;;  %v431_v12 = vld [vmem:[#allocation7 + $0x38] sm:$0xff]  ;;  %v430_v13 = vld [vmem:[#allocation7 + $0x30] sm:$0xff]  ;;  %v429_v14 = vld [vmem:[#allocation7 + $0x28] sm:$0xff] }
  0x18   :  { %279 = vmatpush.bf16.msra.mxu2 %v431_v12  ;;  %v428_v15 = vld [vmem:[#allocation7 + $0x20] sm:$0xff]  ;;  %v440_v17 = vld [vmem:[%s630_s2] ss:$0 sm:$0xff]  ;;  %v427_v24 = vld [vmem:[#allocation7 + $0x18] sm:$0xff] }
  0x19   :  { %195 = vmatpush.bf16.msra.mxu1 %v422_v5  ;;  %v426_v25 = vld [vmem:[#allocation7 + $0x10] sm:$0xff]  ;;  %v425_v26 = vld [vmem:[#allocation7 + $0x8] sm:$0xff]  ;;  %v424_v27 = vld [vmem:[#allocation7] sm:$0xff] }
  0x1a   :  { %v441_v29 = vld [vmem:[%s632_s4] ss:$0 sm:$0xff] }
  0x1b   :  { %v442_v36 = vld [vmem:[%s634_s6] ss:$0 sm:$0xff] }
  0x1c   :  { %280 = vmatpush.bf16.msra.mxu2 %v430_v13 }
  0x1d   :  { %196 = vmatpush.bf16.msra.mxu1 %v421_v6 }
  0x20   :  { %281 = vmatpush.bf16.msra.mxu2 %v429_v14 }
  0x21   :  { %197 = vmatpush.bf16.msra.mxu1 %v420_v7 }
  0x24   :  { %282 = vmatpush.bf16.msra.mxu2 %v428_v15 }
  0x25   :  { %198 = vmatpush.bf16.msra.mxu1 %v419_v8 }
  0x28   :  { %283 = vmatpush.bf16.msra.mxu2 %v427_v24 }
  0x29   :  { %199 = vmatpush.bf16.msra.mxu1 %v418_v9 }
  0x2c   :  { %284 = vmatpush.bf16.msra.mxu2 %v426_v25 }
  0x2d   :  { %200 = vmatpush.bf16.msra.mxu1 %v417_v10 }
  0x30   :  { %285 = vmatpush.bf16.msra.mxu2 %v425_v26 }
  0x31   :  { %201 = vmatpush.bf16.msra.mxu1 %v416_v11 }
  0x34   :  { %286 = vmatpush.bf16.msra.mxu2 %v424_v27 }
  0x94   :  { %v118_v16 = vpop.f32.mrf.mxu0 }
  0x95   :  { %v119_v18 = vadd.f32 %v440_v17, %v118_v16 }
  0x97   :  { %v123_v21 = vmax.f32 %v119_v18, 0.0 }
  0x9c   :  { %v120_v19 = vpop.f32.mrf.mxu0 }
  0x9d   :  { %v121_v20 = vadd.f32 %v440_v17, %v120_v19 }
  0x9f   :  { %v124_v22 = vmax.f32 %v121_v20, 0.0 }
  0xa1   :  { %v125_v23 = vpack.c.bf16 %v124_v22, %v123_v21 }
  0xa3   :  { %202 = vmatmul.bf16.vlgmr.msra.gmra.mxu1 %v125_v23 }
 0x120   :  { %v203_v28 = vpop.f32.mrf.mxu1 }
 0x121   :  { %v204_v30 = vadd.f32 %v441_v29, %v203_v28 }
 0x123   :  { %v208_v33 = vmax.f32 %v204_v30, 0.0 }
 0x128   :  { %v205_v31 = vpop.f32.mrf.mxu1 }
 0x129   :  { %v206_v32 = vadd.f32 %v441_v29, %v205_v31 }
 0x12b   :  { %v209_v34 = vmax.f32 %v206_v32, 0.0 }
 0x12d   :  { %v210_v35 = vpack.c.bf16 %v209_v34, %v208_v33 }
 0x12f   :  { %287 = vmatmul.bf16.vlgmr.msra.gmra.mxu2 %v210_v35 }
 0x1b2   :  { %v288_v37 = vpop.f32.mrf.mxu2 }
 0x1b3   :  { %v289_v38 = vadd.f32 %v442_v36, %v288_v37 }
 0x1b5   :  { %293 = vmax.xlane.f32.xlu0 %v289_v38 }
 0x1ba   :  { %v290_v39 = vpop.f32.mrf.mxu2 }
 0x1bb   :  { %v291_v40 = vadd.f32 %v442_v36, %v290_v39 }
 0x1bd   :  { %295 = vmax.xlane.f32.xlu0 %v291_v40 }
 0x228   :  { %v294_v41 = vpop.xlane.xlu0 %293 }
 0x229   :  { %v297_v42 = vsub.f32 %v289_v38, %v294_v41 }
 0x22b   :  { %v299_v43 = vmul.f32 1.442695, %v297_v42 }
 0x22d   :  { %443 = vpow2.f32 %v299_v43 }
 0x230   :  { %v296_v44 = vpop.xlane.xlu0 %295 }
 0x231   :  { %v298_v45 = vsub.f32 %v291_v40, %v296_v44 }
 0x233   :  { %v444_v46 = vpop.eup %443  ;;  %v301_v47 = vmul.f32 1.442695, %v298_v45 }
 0x234   :  { %303 = vadd.xlane.f32.xlu1 %v444_v46 }
 0x235   :  { %445 = vpow2.f32 %v301_v47 }
 0x23b   :  { %v446_v48 = vpop.eup %445 }
 0x23c   :  { %305 = vadd.xlane.f32.xlu1 %v446_v48 }
 0x2a7   :  { %v304_v49 = vpop.xlane.xlu1 %303 }
 0x2a8   :  { %447 = vrcp.f32 %v304_v49  ;;  %v318_v54 = vand.u32 2147483648, %v304_v49  ;;  %v316_v56 = vand.u32 2147483647, %v304_v49  ;;  %vm312_vm2 = vweird.f32 %v304_v49 }
 0x2aa   :  { %v319_v59 = vor.u32 1.1754944e-38, %v318_v54  ;;  %vm317_vm4 = vcmp.eq.f32.partialorder %v316_v56, 8.507059e+37 }
 0x2ae   :  { %v448_v50 = vpop.eup %447 }
 0x2af   :  { %v308_v51 = vmul.f32 %v448_v50, %v304_v49  ;;  %v306_v52 = vpop.xlane.xlu1 %305  ;;  %vm313_vm1 = vweird.f32 %v448_v50 }
 0x2b0   :  { %449 = vrcp.f32 %v306_v52  ;;  %vm314_vm3 = vmor %vm312_vm2, %vm313_vm1  ;;  %v333_v1 = vand.u32 2147483648, %v306_v52  ;;  %v331_v3 = vand.u32 2147483647, %v306_v52  ;;  %vm327_vm6 = vweird.f32 %v306_v52 }
 0x2b1   :  { %v309_v53 = vsub.f32 1.0, %v308_v51 }
 0x2b2   :  { %v334_v5 = vor.u32 1.1754944e-38, %v333_v1  ;;  %vm332_vm8 = vcmp.eq.f32.partialorder %v331_v3, 8.507059e+37 }
 0x2b3   :  { %v310_v55 = vmul.f32 %v448_v50, %v309_v53 }
 0x2b5   :  { %v311_v57 = vadd.f32 %v448_v50, %v310_v55 }
 0x2b6   :  { %v450_v58 = vpop.eup %449 }
 0x2b7   :  { %v315_v60 = vsel %vm314_vm3, %v448_v50, %v311_v57  ;;  %v323_v61 = vmul.f32 %v450_v58, %v306_v52  ;;  %vm328_vm5 = vweird.f32 %v450_v58 }
 0x2b8   :  { %v320_v62 = vsel %vm317_vm4, %v319_v59, %v315_v60  ;;  %vm329_vm7 = vmor %vm327_vm6, %vm328_vm5 }
 0x2b9   :  { %v321_v63 = vmul.f32 %v444_v46, %v320_v62  ;;  %v324_v0 = vsub.f32 1.0, %v323_v61 }
 0x2bb   :  { %337 = vst [vmem:[%s635_s7] sm:$0xff] %v321_v63  ;;  %v325_v2 = vmul.f32 %v450_v58, %v324_v0 }
 0x2bd   :  { %v326_v4 = vadd.f32 %v450_v58, %v325_v2 }
 0x2bf   :  { %v330_v6 = vsel %vm329_vm7, %v450_v58, %v326_v4 }
 0x2c0   :  { %v335_v7 = vsel %vm332_vm8, %v334_v5, %v330_v6 }
 0x2c1   :  { %v336_v8 = vmul.f32 %v446_v48, %v335_v7 }
 0x2c3   :  { %338 = vst [vmem:[%s635_s7 + $0x8] sm:$0xff] %v336_v8 }
 0x2c4   :  { %343 = vsyncpa [#allocation3], 1 }
 0x2c5   :  { %344 = vsyncpa [#allocation5], 1 }
 0x2c6   :  { %345 = vsyncpa [#allocation8], 1 }

</bundles_post_ra>
